<compile_context>
chip_gen: v5e
topology: v5e:2x2
jax: 0.10.0
libtpu: 0.0.40
codegen_flags: <defaults>
</compile_context>

<pallas_src>
import functools

import jax
import jax.numpy as jnp
from jax.experimental import pallas as pl
from jax.experimental.pallas import tpu as pltpu


def _round_up(x, m):
    return ((x + m - 1) // m) * m


def _num_tensorcores():
    """2 TensorCores per chip on v7x, 1 on v5e/v6e (safe fallback: 1)."""
    try:
        kind = jax.devices()[0].device_kind.lower()
    except Exception:
        return 1
    return 2 if ("v7" in kind or "7x" in kind) else 1


def _lenloss_kernel(*refs, n_valid, tile_n, tiles_per_split, has_weight,
                    needs_mask):
    """One grid step processes a lane-dense (C, tile_n) tile of rows.

    refs (has_weight=True):  pred (C,TN), label (1,TN), weight (1,TN),
                             out (8,128), acc (1,TN) scratch
    refs (has_weight=False): pred, label, out, acc
    """
    if has_weight:
        pred_ref, label_ref, weight_ref, out_ref, acc_ref = refs
    else:
        pred_ref, label_ref, out_ref, acc_ref = refs
        weight_ref = None

    s = pl.program_id(0)          # split (TensorCore) index
    i = pl.program_id(1)          # tile index within the split

    @pl.when(i == 0)
    def _():
        acc_ref[...] = jnp.zeros_like(acc_ref)

    logits = pred_ref[...].astype(jnp.float32)                  # (C, TN)

    # Numerically stable log-sum-exp over classes (sublane axis).
    m = jnp.max(logits, axis=0, keepdims=True)                  # (1, TN)
    lse = m + jnp.log(jnp.sum(jnp.exp(logits - m), axis=0, keepdims=True))

    # Gather logits[label[j], j] via a one-hot compare against a sublane iota.
    # TODO(synk): F.cross_entropy ignore_index semantics are not reproduced;
    # an out-of-range label silently contributes loss = lse for that row.
    labels = label_ref[...]                                     # (1, TN) int32
    row = jax.lax.broadcasted_iota(jnp.int32, logits.shape, 0)  # (C, TN)
    picked = jnp.sum(jnp.where(row == labels, logits, 0.0),
                     axis=0, keepdims=True)                     # (1, TN)

    per_row = lse - picked                                      # (1, TN)
    if has_weight:
        per_row = per_row * weight_ref[...].astype(jnp.float32)

    if needs_mask:
        # Only the tiles that straddle (or lie past) n_valid pay for the mask.
        t = s * tiles_per_split + i                  # logical (unclamped) tile
        is_boundary = (t + 1) * tile_n > n_valid

        @pl.when(jnp.logical_not(is_boundary))
        def _():
            acc_ref[...] = acc_ref[...] + per_row

        @pl.when(is_boundary)
        def _():
            lane = jax.lax.broadcasted_iota(jnp.int32, per_row.shape, 1)
            gidx = t * tile_n + lane
            acc_ref[...] = acc_ref[...] + jnp.where(gidx < n_valid,
                                                    per_row, 0.0)
    else:
        acc_ref[...] = acc_ref[...] + per_row

    @pl.when(i == pl.num_programs(1) - 1)
    def _():
        total = jnp.sum(acc_ref[...])                           # one XLU reduce
        ri = jax.lax.broadcasted_iota(jnp.int32, out_ref.shape, 0)
        ci = jax.lax.broadcasted_iota(jnp.int32, out_ref.shape, 1)
        out_ref[...] = jnp.where((ri == 0) & (ci == 0), total, 0.0)


def len_loss(pred, target, weight=None, *, loss_weight=1.0, avg_factor=None,
             reduction='mean', max_tile_n=32768, num_splits=None,
             vmem_budget_bytes=24 * 1024 * 1024):
    """Pallas implementation of LenLoss.forward ('mean'/'sum' reductions)."""
    n, num_classes = pred.shape
    if n == 0:
        # ce(): `if label.numel() == 0: return pred.sum() * 0`
        return jnp.sum(pred).astype(jnp.float32) * 0.0 * loss_weight

    if reduction not in ('mean', 'sum'):
        # TODO(synk): reduction='none' (per-row loss output) not implemented.
        raise NotImplementedError("reduction='none' not supported here")

    has_weight = weight is not None

    # Lane-dense layout: rows on the 128-lane axis, classes on sublanes.
    # (Single remaining wrapper-side pass over pred; no jnp.pad anywhere.)
    pred_t = pred.T                                             # (C, N)
    if target.dtype != jnp.int32:
        target = target.astype(jnp.int32)
    labels = target.reshape(1, n)                               # free reshape
    inputs = [pred_t, labels]

    # Tile size: biggest multiple of 128 rows that fits the VMEM budget
    # (double-buffered pred/label/weight blocks + the accumulator; the
    # (1, tile_n) streams pad to 8 sublanes).
    cp = _round_up(num_classes, 8)
    bytes_per_lane = 2 * 4 * cp + (2 + (2 if has_weight else 0) + 1) * 4 * 8
    cap = max(128, (vmem_budget_bytes // bytes_per_lane) // 128 * 128)
    tile_cap = max(128, min((int(max_tile_n) // 128) * 128, cap))

    if n <= tile_cap:
        # Single exact tile: block dims equal the full array dims, so no
        # boundary handling (and no padding) is needed at all.
        tile_n = n
    else:
        tile_n = tile_cap                                       # multiple of 128

    total_tiles = (n + tile_n - 1) // tile_n
    if num_splits is None:
        num_splits = _num_tensorcores()
    num_splits = max(1, min(int(num_splits), total_tiles))
    tiles_per_split = (total_tiles + num_splits - 1) // num_splits
    last_tile = total_tiles - 1
    needs_mask = (num_splits * tiles_per_split * tile_n != n)

    def idx(s, i):
        # Clamp redundant / uneven-split slots onto the last valid tile; their
        # contribution is zeroed by the boundary mask inside the kernel.
        return (0, jnp.minimum(s * tiles_per_split + i, last_tile))

    in_specs = [
        pl.BlockSpec((num_classes, tile_n), idx),
        pl.BlockSpec((1, tile_n), idx),
    ]
    if has_weight:
        inputs.append(weight.reshape(1, n))
        in_specs.append(pl.BlockSpec((1, tile_n), idx))

    kernel = functools.partial(
        _lenloss_kernel, n_valid=n, tile_n=tile_n,
        tiles_per_split=tiles_per_split, has_weight=has_weight,
        needs_mask=needs_mask)

    # Each split writes one lane-dense (8, 128) block whose only nonzero
    # element ([0, 0]) is that split's partial sum.
    partials = pl.pallas_call(
        kernel,
        out_shape=jax.ShapeDtypeStruct((num_splits * 8, 128), jnp.float32),
        grid_spec=pltpu.PrefetchScalarGridSpec(
            num_scalar_prefetch=0,
            grid=(num_splits, tiles_per_split),
            in_specs=in_specs,
            out_specs=pl.BlockSpec((8, 128), lambda s, i: (s, 0)),
            scratch_shapes=[pltpu.VMEM((1, tile_n), jnp.float32)],
        ),
        compiler_params=pltpu.CompilerParams(
            dimension_semantics=("parallel", "arbitrary"),
            vmem_limit_bytes=32 * 1024 * 1024,
        ),
    )(*inputs)

    total = jnp.sum(partials)
    if reduction == 'mean':
        denom = avg_factor if avg_factor is not None else float(n)
        total = total / denom
    return total * loss_weight


def _reference(pred, target, weight=None, loss_weight=1.0, avg_factor=None,
               reduction='mean'):
    """Plain-JAX reference matching F.cross_entropy(reduction='none') + reduce."""
    logits = pred.astype(jnp.float32)
    lse = jax.scipy.special.logsumexp(logits, axis=-1)
    picked = jnp.take_along_axis(logits, target[:, None].astype(jnp.int32),
                                 axis=-1)[:, 0]
    loss = lse - picked
    if weight is not None:
        loss = loss * weight.astype(jnp.float32)
    if reduction == 'mean':
        loss = jnp.mean(loss) if avg_factor is None else jnp.sum(loss) / avg_factor
    elif reduction == 'sum':
        loss = jnp.sum(loss)
    return loss * loss_weight


if __name__ == "__main__":
    # Shapes implied by the module: pred (B*nquery, npts), target (B*nquery,)
    B, nquery, npts = 2, 8, 8
    N = B * nquery

    key = jax.random.PRNGKey(0)
    k1, k2, k3 = jax.random.split(key, 3)
    pred = jax.random.normal(k1, (N, npts), dtype=jnp.float32)
    target = jax.random.randint(k2, (N,), 0, npts, dtype=jnp.int32)
    weight = jax.random.uniform(k3, (N,), dtype=jnp.float32)

    # Weighted, mean reduction (single exact tile, N not a multiple of 128).
    out = jax.block_until_ready(len_loss(pred, target, weight, loss_weight=2.0))
    ref = _reference(pred, target, weight, loss_weight=2.0)
    assert jnp.allclose(out, ref, rtol=1e-5, atol=1e-5), (out, ref)

    # Unweighted path (kernel variant with no weight input stream).
    out2 = jax.block_until_ready(len_loss(pred, target, None))
    ref2 = _reference(pred, target, None)
    assert jnp.allclose(out2, ref2, rtol=1e-5, atol=1e-5), (out2, ref2)

    # Ragged multi-tile + forced 2-way split: exercises multi-tile
    # accumulation, the index_map clamp and the gated boundary mask.
    N2 = 5000
    k4, k5, k6 = jax.random.split(jax.random.PRNGKey(1), 3)
    pred2 = jax.random.normal(k4, (N2, npts), dtype=jnp.float32)
    target2 = jax.random.randint(k5, (N2,), 0, npts, dtype=jnp.int32)
    weight2 = jax.random.uniform(k6, (N2,), dtype=jnp.float32)
    out3 = jax.block_until_ready(
        len_loss(pred2, target2, weight2, max_tile_n=512, num_splits=2))
    ref3 = _reference(pred2, target2, weight2)
    assert jnp.allclose(out3, ref3, rtol=2e-4, atol=1e-5), (out3, ref3)

    # Evenly-divisible multi-tile (no mask compiled) + explicit avg_factor.
    N3 = 1024
    k7, k8 = jax.random.split(jax.random.PRNGKey(2), 2)
    pred3 = jax.random.normal(k7, (N3, npts), dtype=jnp.float32)
    target3 = jax.random.randint(k8, (N3,), 0, npts, dtype=jnp.int32)
    out4 = jax.block_until_ready(
        len_loss(pred3, target3, None, max_tile_n=256, num_splits=2,
                 avg_factor=123.0))
    ref4 = _reference(pred3, target3, None, avg_factor=123.0)
    assert jnp.allclose(out4, ref4, rtol=2e-4, atol=1e-5), (out4, ref4)

    # Sum reduction.
    out5 = jax.block_until_ready(
        len_loss(pred3, target3, None, reduction='sum', max_tile_n=512))
    ref5 = _reference(pred3, target3, None, reduction='sum')
    assert jnp.allclose(out5, ref5, rtol=2e-4, atol=1e-4), (out5, ref5)

    print("KERNEL_OK")
</pallas_src>

<mosaic_0001>
module attributes {stable_mosaic.version = 11 : i64} {
  func.func @_lenloss_kernel(%arg0: i32, %arg1: i32, %arg2: memref<8x16xf32, #tpu.memory_space<vmem>>, %arg3: memref<1x16xi32, #tpu.memory_space<vmem>>, %arg4: memref<1x16xf32, #tpu.memory_space<vmem>>, %arg5: memref<8x128xf32, #tpu.memory_space<vmem>>, %arg6: memref<1x16xf32, #tpu.memory_space<vmem>>) attributes {dimension_semantics = [#tpu.dimension_semantics<parallel>, #tpu.dimension_semantics<arbitrary>], iteration_bounds = array<i64: 1, 1>, scalar_prefetch = 0 : i64, scratch_operands = 1 : i64, tpu.core_type = #tpu.core_type<tc>, window_params = [{transform_indices = @transform_0, window_bounds = array<i64: 8, 16>}, {transform_indices = @transform_1, window_bounds = array<i64: 1, 16>}, {transform_indices = @transform_2, window_bounds = array<i64: 1, 16>}, {transform_indices = @transform_3, window_bounds = array<i64: 8, 128>}]} {
    %c0_i32 = arith.constant 0 : i32
    %0 = arith.cmpi eq, %arg1, %c0_i32 : i32
    %1 = arith.extui %0 : i1 to i32
    %c0_i32_0 = arith.constant 0 : i32
    %2 = arith.cmpi ne, %1, %c0_i32_0 : i32
    scf.if %2 {
      %cst_15 = arith.constant 0.000000e+00 : f32
      %30 = vector.broadcast %cst_15 : f32 to vector<1x16xf32>
      %c0_16 = arith.constant 0 : index
      %c0_17 = arith.constant 0 : index
      %31 = vector.load %arg6[%c0_16, %c0_17] : memref<1x16xf32, #tpu.memory_space<vmem>>, vector<1x16xf32>
      tpu.vector_store %arg6[%c0_16, %c0_17], %30 {strides = array<i32>} : memref<1x16xf32, #tpu.memory_space<vmem>>, vector<1x16xf32>,
    } else {
    }
    %c0 = arith.constant 0 : index
    %c0_1 = arith.constant 0 : index
    %3 = vector.load %arg2[%c0, %c0_1] : memref<8x16xf32, #tpu.memory_space<vmem>>, vector<8x16xf32>
    %cst = arith.constant dense<0xFF800000> : vector<16xf32>
    %4 = vector.multi_reduction <maximumf>, %3, %cst [0] : vector<8x16xf32> to vector<16xf32>
    %5 = vector.shape_cast %4 : vector<16xf32> to vector<1x16xf32>
    %6 = vector.broadcast %5 : vector<1x16xf32> to vector<8x16xf32>
    %7 = arith.subf %3, %6 : vector<8x16xf32>
    %8 = math.exp %7 : vector<8x16xf32>
    %cst_2 = arith.constant dense<0.000000e+00> : vector<16xf32>
    %9 = vector.multi_reduction <add>, %8, %cst_2 [0] : vector<8x16xf32> to vector<16xf32>
    %10 = vector.shape_cast %9 : vector<16xf32> to vector<1x16xf32>
    %11 = math.log %10 : vector<1x16xf32>
    %12 = arith.addf %5, %11 : vector<1x16xf32>
    %c0_3 = arith.constant 0 : index
    %c0_4 = arith.constant 0 : index
    %13 = vector.load %arg3[%c0_3, %c0_4] : memref<1x16xi32, #tpu.memory_space<vmem>>, vector<1x16xi32>
    %14 = tpu.iota {dimensions = array<i32: 0>} : vector<8x16xi32>
    %15 = vector.broadcast %13 : vector<1x16xi32> to vector<8x16xi32>
    %16 = arith.cmpi eq, %14, %15 : vector<8x16xi32>
    %cst_5 = arith.constant 0.000000e+00 : f32
    %17 = vector.broadcast %cst_5 : f32 to vector<8x16xf32>
    %18 = arith.select %16, %3, %17 : vector<8x16xi1>, vector<8x16xf32>
    %cst_6 = arith.constant dense<0.000000e+00> : vector<16xf32>
    %19 = vector.multi_reduction <add>, %18, %cst_6 [0] : vector<8x16xf32> to vector<16xf32>
    %20 = vector.shape_cast %19 : vector<16xf32> to vector<1x16xf32>
    %21 = arith.subf %12, %20 : vector<1x16xf32>
    %c0_7 = arith.constant 0 : index
    %c0_8 = arith.constant 0 : index
    %22 = vector.load %arg4[%c0_7, %c0_8] : memref<1x16xf32, #tpu.memory_space<vmem>>, vector<1x16xf32>
    %23 = arith.mulf %21, %22 : vector<1x16xf32>
    %c0_9 = arith.constant 0 : index
    %c0_10 = arith.constant 0 : index
    %24 = vector.load %arg6[%c0_9, %c0_10] : memref<1x16xf32, #tpu.memory_space<vmem>>, vector<1x16xf32>
    %25 = arith.addf %24, %23 : vector<1x16xf32>
    %c0_11 = arith.constant 0 : index
    %c0_12 = arith.constant 0 : index
    %26 = vector.load %arg6[%c0_11, %c0_12] : memref<1x16xf32, #tpu.memory_space<vmem>>, vector<1x16xf32>
    tpu.vector_store %arg6[%c0_11, %c0_12], %25 {strides = array<i32>} : memref<1x16xf32, #tpu.memory_space<vmem>>, vector<1x16xf32>,
    %c0_i32_13 = arith.constant 0 : i32
    %27 = arith.cmpi eq, %arg1, %c0_i32_13 : i32
    %28 = arith.extui %27 : i1 to i32
    %c0_i32_14 = arith.constant 0 : i32
    %29 = arith.cmpi ne, %28, %c0_i32_14 : i32
    scf.if %29 {
      %c0_15 = arith.constant 0 : index
      %c0_16 = arith.constant 0 : index
      %30 = vector.load %arg6[%c0_15, %c0_16] : memref<1x16xf32, #tpu.memory_space<vmem>>, vector<1x16xf32>
      %31 = vector.shape_cast %30 : vector<1x16xf32> to vector<1x1x16xf32>
      %cst_17 = arith.constant dense<0.000000e+00> : vector<1xf32>
      %32 = vector.multi_reduction <add>, %31, %cst_17 [1, 2] : vector<1x1x16xf32> to vector<1xf32>
      %33 = vector.shape_cast %32 : vector<1xf32> to vector<1x1x1xf32>
      %34 = vector.extract %33[0, 0, 0] : f32 from vector<1x1x1xf32>
      %35 = tpu.iota {dimensions = array<i32: 0>} : vector<8x128xi32>
      %36 = tpu.iota {dimensions = array<i32: 1>} : vector<8x128xi32>
      %c0_i32_18 = arith.constant 0 : i32
      %37 = vector.broadcast %c0_i32_18 : i32 to vector<8x128xi32>
      %38 = arith.cmpi eq, %35, %37 : vector<8x128xi32>
      %c0_i32_19 = arith.constant 0 : i32
      %39 = vector.broadcast %c0_i32_19 : i32 to vector<8x128xi32>
      %40 = arith.cmpi eq, %36, %39 : vector<8x128xi32>
      %41 = arith.andi %38, %40 : vector<8x128xi1>
      %cst_20 = arith.constant 0.000000e+00 : f32
      %42 = vector.broadcast %34 : f32 to vector<8x128xf32>
      %43 = vector.broadcast %cst_20 : f32 to vector<8x128xf32>
      %44 = arith.select %41, %42, %43 : vector<8x128xi1>, vector<8x128xf32>
      %c0_21 = arith.constant 0 : index
      %c0_22 = arith.constant 0 : index
      %45 = vector.load %arg5[%c0_21, %c0_22] : memref<8x128xf32, #tpu.memory_space<vmem>>, vector<8x128xf32>
      tpu.vector_store %arg5[%c0_21, %c0_22], %44 {strides = array<i32>} : memref<8x128xf32, #tpu.memory_space<vmem>>, vector<8x128xf32>,
    } else {
    }
    return
  }
  func.func @transform_0(%arg0: i32, %arg1: i32) -> (i32, i32) {
    %c1_i32 = arith.constant 1 : i32
    %0 = arith.muli %arg0, %c1_i32 : i32
    %1 = arith.addi %0, %arg1 : i32
    %c0_i32 = arith.constant 0 : i32
    %2 = arith.minsi %1, %c0_i32 : i32
    %c0_i32_0 = arith.constant 0 : i32
    %c0_i32_1 = arith.constant 0 : i32
    return %c0_i32_0, %2 : i32, i32
  }
  func.func @transform_1(%arg0: i32, %arg1: i32) -> (i32, i32) {
    %c1_i32 = arith.constant 1 : i32
    %0 = arith.muli %arg0, %c1_i32 : i32
    %1 = arith.addi %0, %arg1 : i32
    %c0_i32 = arith.constant 0 : i32
    %2 = arith.minsi %1, %c0_i32 : i32
    %c0_i32_0 = arith.constant 0 : i32
    %c0_i32_1 = arith.constant 0 : i32
    return %c0_i32_0, %2 : i32, i32
  }
  func.func @transform_2(%arg0: i32, %arg1: i32) -> (i32, i32) {
    %c1_i32 = arith.constant 1 : i32
    %0 = arith.muli %arg0, %c1_i32 : i32
    %1 = arith.addi %0, %arg1 : i32
    %c0_i32 = arith.constant 0 : i32
    %2 = arith.minsi %1, %c0_i32 : i32
    %c0_i32_0 = arith.constant 0 : i32
    %c0_i32_1 = arith.constant 0 : i32
    return %c0_i32_0, %2 : i32, i32
  }
  func.func @transform_3(%arg0: i32, %arg1: i32) -> (i32, i32) {
    %c0_i32 = arith.constant 0 : i32
    %c0_i32_0 = arith.constant 0 : i32
    return %arg0, %c0_i32 : i32, i32
  }
}

</mosaic_0001>

<bundles_post_ra>
// kernel: tpu_custom_call.1
= control target key start
LH: loop header
LB: loop body
LE: loop exit
PB: predicated region body
PF: predicated region fallthrough
CT: control target
= control target key end

     0   :  { %8 = vsyncpa [#allocation4], 0  ;;  %s307_s0 = inlined_call_operand.hbm [shape: f32[8,16], index: 0, kind: input, shape index: {}]   ;;  %s308_s1 = inlined_call_operand.hbm [shape: s32[1,16], index: 1, kind: input, shape index: {}]   ;;  %s309_s2 = inlined_call_operand.vmem [shape: f32[1,16], index: 2, kind: input, shape index: {}]   ;;  %s310_s3 = inlined_call_operand.hbm [shape: f32[8,128], index: 3, kind: output, shape index: {}]  }
   0x1   :  { %9 = vsyncpa [#allocation7], 0 }
   0x2   :  { %10 = vsyncpa [#allocation5], 0  ;;  %s21_s14 = sshll.u32 %s307_s0, 4  ;;  %s265_s15 = smov [#allocation3]   ;;  %s22_s14 = int_to_ptr.hbm [resolvable:$true] %s21_s14 }
   0x3   :  { %s23_s16 = sshll.u32 %s265_s15, 4  ;;  %s36_s19 = sshll.u32 %s308_s1, 4  ;;  %s24_s16 = int_to_ptr.vmem [resolvable:$true] %s23_s16  ;;  %s37_s19 = int_to_ptr.hbm [resolvable:$true] %s36_s19 }
   0x4   :  { %26 = dma.hbm_to_vmem [thread:$0]  %s22_s14, 128, %s24_s16, [#allocation4]  }
   0x5   :  { %s266_s20 = smov [#allocation6]  }
   0x6   :  { %s38_s21 = sshll.u32 %s266_s20, 4  ;;  %s39_s21 = int_to_ptr.vmem [resolvable:$true] %s38_s21 }
   0x7   :  { %41 = dma.hbm_to_vmem [thread:$0]  %s37_s19, 16, %s39_s21, [#allocation7]  }
   0x8   :  { %259 = dma.done.wait [#allocation4], 128  }
   0x9   :  { %260 = vsyncadd [#allocation4], 4294967168 }
   0xa   :  { %261 = dma.done.wait [#allocation7], 16  }
   0xb   :  { %262 = vsyncadd [#allocation7], 4294967280  ;;  %vm86_vm0 = vcmask 122880   ;;  %v267_v0 = vmov 0.0   ;;  %vm89_vm1 = vcmask 130048   ;;  %v88_v1 = vld [vmem:[#allocation3] sm:$0xff]  ;;  %v111_v7 = vlaneseq }
   0xc   :  { %87 = vst.msk [vmem:[#allocation2] sm:$0x1] %vm86_vm0, %v267_v0  ;;  %v90_v2 = vsel %vm89_vm1, %v88_v1, -inf  ;;  %v182_v11 = vld [vmem:[#allocation6] ss:$0 sm:$0xff]  ;;  %s159_s25 = sshll.u32 %s310_s3, 4  ;;  %s160_s25 = int_to_ptr.hbm [resolvable:$true] %s159_s25 }
   0xd   :  { %v91_v3 = vrot.slane %v90_v2, 4  ;;  %v112_v10 = vshrl.u32 %v111_v7, 7  ;;  %v124_v33 = vld [vmem:[%s309_s2] sm:$0x1]  ;;  %v145_v47 = vand.u32 127, %v111_v7  ;;  %s268_s2 = smov [#allocation8]  }
   0xe   :  { %s157_s22 = sshll.u32 %s268_s2, 4  ;;  %s158_s22 = int_to_ptr.vmem [resolvable:$true] %s157_s22 }
   0xf   :  { %v92_v4 = vmax.f32 %v90_v2, %v91_v3  ;;  %vm114_vm2 = vcmp.eq.s32.totalorder %v112_v10, %v182_v11  ;;  %vm146_vm3 = vcmp.eq.s32.totalorder %v112_v10, 0  ;;  %vm147_vm4 = vcmp.eq.s32.totalorder %v145_v47, 0 }
  0x10   :  { %v115_v14 = vsel %vm114_vm2, %v88_v1, 0.0  ;;  %vm148_vm5 = vmand %vm146_vm3, %vm147_vm4 }
  0x11   :  { %v93_v5 = vrot.slane %v92_v4, 2  ;;  %v116_v15 = vsel %vm89_vm1, %v115_v14, 0.0 }
  0x12   :  { %v117_v18 = vrot.slane %v116_v15, 4 }
  0x13   :  { %v94_v6 = vmax.f32 %v92_v4, %v93_v5  ;;  %v126_v35 = vld [vmem:[#allocation2] sm:$0x1] }
  0x14   :  { %v118_v21 = vadd.f32 %v117_v18, %v116_v15 }
  0x15   :  { %v95_v8 = vrot.slane %v94_v6, 1 }
  0x16   :  { %v119_v24 = vrot.slane %v118_v21, 2 }
  0x17   :  { %v96_v9 = vmax.f32 %v94_v6, %v95_v8 }
  0x18   :  { %v120_v27 = vadd.f32 %v119_v24, %v118_v21 }
  0x19   :  { %v97_v12 = vsub.f32 %v88_v1, %v96_v9 }
  0x1a   :  { %v121_v28 = vrot.slane %v120_v27, 1 }
  0x1b   :  { %v98_v13 = vmul.f32 1.442695, %v97_v12 }
  0x1c   :  { %v122_v31 = vadd.f32 %v121_v28, %v120_v27 }
  0x1d   :  { %183 = vpow2.f32 %v98_v13 }
  0x23   :  { %v184_v16 = vpop.eup %183 }
  0x24   :  { %v100_v17 = vsel %vm89_vm1, %v184_v16, 0.0 }
  0x25   :  { %v101_v19 = vrot.slane %v100_v17, 4 }
  0x27   :  { %v102_v20 = vadd.f32 %v101_v19, %v100_v17 }
  0x29   :  { %v103_v22 = vrot.slane %v102_v20, 2 }
  0x2b   :  { %v104_v23 = vadd.f32 %v103_v22, %v102_v20 }
  0x2d   :  { %v105_v25 = vrot.slane %v104_v23, 1 }
  0x2f   :  { %v106_v26 = vadd.f32 %v105_v25, %v104_v23 }
  0x31   :  { %185 = vlog2.f32 %v106_v26 }
  0x37   :  { %v186_v29 = vpop.eup %185 }
  0x38   :  { %v108_v30 = vmul.f32 0.6931472, %v186_v29 }
  0x3a   :  { %v109_v32 = vadd.f32 %v108_v30, %v96_v9 }
  0x3c   :  { %v123_v34 = vsub.f32 %v109_v32, %v122_v31 }
  0x3e   :  { %v125_v36 = vmul.f32 %v124_v33, %v123_v34 }
  0x40   :  { %v127_v37 = vadd.f32 %v126_v35, %v125_v36 }
  0x42   :  { %129 = vst.msk [vmem:[#allocation2] sm:$0x1] %vm86_vm0, %v127_v37 }
  0x49   :  { %v133_v38 = vld [vmem:[#allocation2] sm:$0x1] }
  0x4a   :  { %v134_v39 = vsel %vm86_vm0, %v133_v38, 0.0 }
  0x4b   :  { %135 = vadd.xlane.f32.xlu0 %v134_v39 }
  0xbe   :  { %v136_v40 = vpop.xlane.xlu0 %135 }
  0xbf   :  { %v137_v41 = vrot.slane %v136_v40, 4 }
  0xc1   :  { %v138_v42 = vadd.f32 %v137_v41, %v136_v40 }
  0xc3   :  { %v139_v43 = vrot.slane %v138_v42, 2 }
  0xc5   :  { %v140_v44 = vadd.f32 %v139_v43, %v138_v42 }
  0xc7   :  { %v141_v45 = vrot.slane %v140_v44, 1 }
  0xc9   :  { %v142_v46 = vadd.f32 %v141_v45, %v140_v44 }
  0xcb   :  { %176 = vpush %v142_v46 }
  0xfc   :  { %s177_s26 = spop %176 }
  0xfd   :  { %v149_v48 = vstv %s177_s26 }
  0xfe   :  { %v150_v49 = vsel %vm148_vm5, %v149_v48, 0.0 }
  0xff   :  { %151 = vst [vmem:[#allocation8] sm:$0xff] %v150_v49 }
 0x100   :  { %162 = dma.vmem_to_hbm [thread:$0]  %s158_s22, 128, %s160_s25, [#allocation5]  }
 0x101   :  { %263 = dma.done.wait [#allocation5], 128  }
 0x102   :  { %264 = vsyncadd [#allocation5], 4294967168 }
 0x103   :  { %167 = vsyncpa [#allocation4], 1 }
 0x104   :  { %168 = vsyncpa [#allocation7], 1 }
 0x105   :  { %169 = vsyncpa [#allocation5], 1 }

</bundles_post_ra>
